<compile_context>
chip_gen: v5e
topology: v5e:2x2
jax: 0.10.0
libtpu: 0.0.40
codegen_flags: <defaults>
</compile_context>

<pallas_src>
import jax
import jax.numpy as jnp
from jax import lax
from jax.experimental import pallas as pl
from jax.experimental.pallas import tpu as pltpu

N = 100                             # torch.rand(100)
NUM_DOUBLINGS = 20                  # for _ in range(20): x *= 2
SCALE = float(2 ** NUM_DOUBLINGS)   # constant-folded doubling loop (exact in f32)
TILE = (8, 128)                     # one full f32 vreg / (8,128) tile
EXP_2POW20 = 0x49800000             # float32 bit pattern of 2.0**20 (exponent only)


def rng_scale_kernel(seed_ref, o_ref):
    """Fill one (8,128) tile with uniform [0, 2**20) f32 values."""
    seed = seed_ref[0].astype(jnp.uint32)

    # Per-element counter (flat index 0..1023) combined with the seed.
    row = lax.broadcasted_iota(jnp.int32, TILE, 0).astype(jnp.uint32)
    col = lax.broadcasted_iota(jnp.int32, TILE, 1).astype(jnp.uint32)
    h = seed + row * jnp.uint32(TILE[1]) + col + jnp.uint32(0x9E3779B9)

    # murmur3 fmix32 finalizer: pure xor/shift/mul VPU ops, good scrambling.
    h = h ^ (h >> jnp.uint32(16))
    h = h * jnp.uint32(0x85EBCA6B)
    h = h ^ (h >> jnp.uint32(13))
    h = h * jnp.uint32(0xC2B2AE35)
    h = h ^ (h >> jnp.uint32(16))

    # Top 23 bits into the mantissa of a float with exponent 2**20:
    #   (1 + m/2^23) * 2^20 - 2^20 == m/2^23 * 2^20  (exact)  in [0, 2^20)
    # -> the *2**20 scale is folded into the exponent, no final multiply.
    fbits = (h >> jnp.uint32(9)) | jnp.uint32(EXP_2POW20)
    f = lax.bitcast_convert_type(fbits, jnp.float32)
    o_ref[...] = f - jnp.float32(SCALE)


@jax.jit
def model_forward(x, seed):
    """Reproduces Model.forward(x): the input x is ignored (as in PyTorch)."""
    del x  # forward() discards its input
    seed_arr = jnp.asarray(seed, dtype=jnp.int32).reshape((1,))

    out_padded = pl.pallas_call(
        rng_scale_kernel,
        out_shape=jax.ShapeDtypeStruct(TILE, jnp.float32),
        in_specs=[pl.BlockSpec(memory_space=pltpu.MemorySpace.SMEM)],
        out_specs=pl.BlockSpec(memory_space=pltpu.MemorySpace.VMEM),
        cost_estimate=pl.CostEstimate(
            flops=TILE[0] * TILE[1] * 10,
            transcendentals=0,
            bytes_accessed=4 + TILE[0] * TILE[1] * 4,
        ),
    )(seed_arr)

    # Slice the first 100 elements inside the jitted graph (kernel stays
    # full-tile / lane-dense).
    return out_padded[0, :N]


if __name__ == "__main__":
    # Example input (ignored by the forward pass, same as the PyTorch module).
    key = jax.random.PRNGKey(0)
    x = jax.random.normal(key, (2, 4, 16, 16), dtype=jnp.float32)
    seed = jnp.array([0], dtype=jnp.int32)

    out = jax.block_until_ready(model_forward(x, seed))

    # Semantic checks: uniform [0,1) scaled by 2**20, shape (100,), float32.
    assert out.shape == (N,) and out.dtype == jnp.float32
    assert bool(jnp.all(jnp.isfinite(out)))
    assert bool(jnp.all(out >= 0.0)) and bool(jnp.all(out < SCALE))
    assert float(jnp.std(out)) > 0.0  # non-degenerate random draw

    # TODO(synk): exact torch.rand (Philox/MT) bit-stream is not reproducible
    # in-kernel; only the uniform-[0,1)*2**20 distribution is preserved.
    print("KERNEL_OK")
</pallas_src>

<mosaic_0001>
module attributes {stable_mosaic.version = 11 : i64} {
  func.func @rng_scale_kernel(%arg0: memref<1xi32, #tpu.memory_space<smem>>, %arg1: memref<8x128xf32, #tpu.memory_space<vmem>>) attributes {dimension_semantics = [], scalar_prefetch = 0 : i64, scratch_operands = 0 : i64, tpu.core_type = #tpu.core_type<tc>} {
    %c0 = arith.constant 0 : index
    %0 = memref.load %arg0[%c0] : memref<1xi32, #tpu.memory_space<smem>>
    %1 = tpu.iota {dimensions = array<i32: 0>} : vector<8x128xi32>
    %2 = tpu.iota {dimensions = array<i32: 1>} : vector<8x128xi32>
    %c128_i32 = arith.constant 128 : i32
    %3 = vector.broadcast %c128_i32 : i32 to vector<8x128xi32>
    %4 = arith.muli %1, %3 : vector<8x128xi32>
    %5 = vector.broadcast %0 : i32 to vector<8x128xi32>
    %6 = arith.addi %5, %4 : vector<8x128xi32>
    %7 = arith.addi %6, %2 : vector<8x128xi32>
    %c-1640531527_i32 = arith.constant -1640531527 : i32
    %8 = vector.broadcast %c-1640531527_i32 : i32 to vector<8x128xi32>
    %9 = arith.addi %7, %8 : vector<8x128xi32>
    %c16_i32 = arith.constant 16 : i32
    %10 = vector.broadcast %c16_i32 : i32 to vector<8x128xi32>
    %11 = arith.shrui %9, %10 : vector<8x128xi32>
    %12 = arith.xori %9, %11 : vector<8x128xi32>
    %c-2048144789_i32 = arith.constant -2048144789 : i32
    %13 = vector.broadcast %c-2048144789_i32 : i32 to vector<8x128xi32>
    %14 = arith.muli %12, %13 : vector<8x128xi32>
    %c13_i32 = arith.constant 13 : i32
    %15 = vector.broadcast %c13_i32 : i32 to vector<8x128xi32>
    %16 = arith.shrui %14, %15 : vector<8x128xi32>
    %17 = arith.xori %14, %16 : vector<8x128xi32>
    %c-1028477387_i32 = arith.constant -1028477387 : i32
    %18 = vector.broadcast %c-1028477387_i32 : i32 to vector<8x128xi32>
    %19 = arith.muli %17, %18 : vector<8x128xi32>
    %c16_i32_0 = arith.constant 16 : i32
    %20 = vector.broadcast %c16_i32_0 : i32 to vector<8x128xi32>
    %21 = arith.shrui %19, %20 : vector<8x128xi32>
    %22 = arith.xori %19, %21 : vector<8x128xi32>
    %c9_i32 = arith.constant 9 : i32
    %23 = vector.broadcast %c9_i32 : i32 to vector<8x128xi32>
    %24 = arith.shrui %22, %23 : vector<8x128xi32>
    %c1233125376_i32 = arith.constant 1233125376 : i32
    %25 = vector.broadcast %c1233125376_i32 : i32 to vector<8x128xi32>
    %26 = arith.ori %24, %25 : vector<8x128xi32>
    %27 = tpu.bitcast %26 : vector<8x128xi32> -> vector<8x128xf32>
    %cst = arith.constant 0x49800000 : f32
    %28 = vector.broadcast %cst : f32 to vector<8x128xf32>
    %29 = arith.subf %27, %28 : vector<8x128xf32>
    %c0_1 = arith.constant 0 : index
    %c0_2 = arith.constant 0 : index
    %30 = vector.load %arg1[%c0_1, %c0_2] : memref<8x128xf32, #tpu.memory_space<vmem>>, vector<8x128xf32>
    tpu.vector_store %arg1[%c0_1, %c0_2], %29 {strides = array<i32>} : memref<8x128xf32, #tpu.memory_space<vmem>>, vector<8x128xf32>,
    return
  }
}

</mosaic_0001>

<bundles_post_ra>
// kernel: model_forward.1
= control target key start
LH: loop header
LB: loop body
LE: loop exit
PB: predicated region body
PF: predicated region fallthrough
CT: control target
= control target key end

     0   :  { %v10_v0 = vlaneseq  ;;  %s53_s0 = inlined_call_operand.<no memory space> [shape: s32[1], index: 0, kind: input, shape index: {}]   ;;  %s54_s1 = inlined_call_operand.vmem [shape: f32[8,128], index: 1, kind: output, shape index: {}]  }
   0x1   :  { %v15_v2 = vstv %s53_s0 }
   0x2   :  { %v11_v1 = vshrl.u32 %v10_v0, 7  ;;  %v13_v3 = vand.u32 127, %v10_v0 }
   0x4   :  { %v14_v4 = vmul.u32 128, %v11_v1 }
   0x6   :  { %v16_v5 = vadd.s32 %v15_v2, %v14_v4 }
   0x8   :  { %v17_v6 = vadd.s32 %v16_v5, %v13_v3 }
   0xa   :  { %v18_v7 = vadd.s32 2654435769, %v17_v6 }
   0xc   :  { %v19_v8 = vshrl.u32 %v18_v7, 16 }
   0xe   :  { %v20_v9 = vxor.u32 %v19_v8, %v18_v7 }
  0x10   :  { %v21_v10 = vmul.u32 2246822507, %v20_v9 }
  0x12   :  { %v22_v11 = vshrl.u32 %v21_v10, 13 }
  0x14   :  { %v23_v12 = vxor.u32 %v22_v11, %v21_v10 }
  0x16   :  { %v24_v13 = vmul.u32 3266489909, %v23_v12 }
  0x18   :  { %v25_v14 = vshrl.u32 %v24_v13, 16 }
  0x1a   :  { %v26_v15 = vxor.u32 %v25_v14, %v24_v13 }
  0x1c   :  { %v27_v16 = vshrl.u32 %v26_v15, 9 }
  0x1e   :  { %v28_v17 = vor.u32 1233125376, %v27_v16 }
  0x20   :  { %v36_v18 = vadd.f32 -1048576.0, %v28_v17 }
  0x22   :  { %31 = vst [vmem:[%s54_s1] sm:$0xff] %v36_v18 }

</bundles_post_ra>
